<compile_context>
chip_gen: v5e
topology: v5e:2x2
jax: 0.10.0
libtpu: 0.0.40
codegen_flags: <defaults>
</compile_context>

<pallas_src>
import functools

import jax
import jax.numpy as jnp
import numpy as np
from jax.experimental import pallas as pl
from jax.experimental.pallas import tpu as pltpu


# -----------------------------------------------------------------------------
# Pallas kernel: one grid step == one batch element (full sequence in VMEM).
# -----------------------------------------------------------------------------
def _encoder_layer_kernel(x_ref, pos_ref,
                          wqk_ref, bqk_ref, wv_ref, bv_ref,
                          wo_ref, bo_ref,
                          w1_ref, b1_ref, w2_ref, b2_ref,
                          g1_ref, be1_ref, g2_ref, be2_ref,
                          o_ref, *, nhead, head_dim, eps):
    f32 = jnp.float32
    bf16 = jnp.bfloat16
    S, D = x_ref.shape

    def mm(a, b):
        # (M, K) @ (K, N) on the MXU: bf16 operands, f32 accumulation.
        return jax.lax.dot_general(
            a.astype(bf16), b.astype(bf16),
            (((1,), (0,)), ((), ())),
            preferred_element_type=f32)

    def bmm(a, b, a_contract=2, b_contract=1):
        # Head-batched matmul: batch dim 0, f32 accumulation.
        return jax.lax.dot_general(
            a.astype(bf16), b.astype(bf16),
            (((a_contract,), (b_contract,)), ((0,), (0,))),
            preferred_element_type=f32)

    def layer_norm(z, g, b):
        mu = jnp.mean(z, axis=-1, keepdims=True)
        zc = z - mu
        var = jnp.mean(zc * zc, axis=-1, keepdims=True)
        return zc * jax.lax.rsqrt(var + eps) * g + b

    x = x_ref[...].astype(f32)                      # (S, D) f32 (residual path)
    pos = pos_ref[...].astype(f32)

    # Cast once, then broadcast for the head-batched projections.
    qk_in_bf = (x + pos).astype(bf16)               # (S, D) bf16
    x_bf = x.astype(bf16)

    # ---- fused Q/K projection (heads stacked along batch axis), V separate ----
    qk_b = jnp.broadcast_to(qk_in_bf[None], (2 * nhead, S, D))
    qk = bmm(qk_b, wqk_ref[...]) + bqk_ref[...]     # (2H, S, hd) f32
    qh = qk[:nhead]                                 # (H, S, hd)
    kh = qk[nhead:]                                 # (H, S, hd)
    x_b = jnp.broadcast_to(x_bf[None], (nhead, S, D))
    vh = bmm(x_b, wv_ref[...]) + bv_ref[...]        # (H, S, hd) f32

    # ---- attention, batched over heads ----
    scale = 1.0 / (float(head_dim) ** 0.5)
    s = bmm(qh, kh, a_contract=2, b_contract=2) * scale      # (H, S, S) f32
    m = jnp.max(s, axis=-1, keepdims=True)
    p = jnp.exp(s - m)
    p = p * pl.reciprocal(jnp.sum(p, axis=-1, keepdims=True), approx=True)
    oh = bmm(p, vh)                                           # (H, S, hd) f32

    # ---- output projection: one head-batched GEMM + leading-axis sum ----
    attn = jnp.sum(bmm(oh, wo_ref[...]), axis=0) + bo_ref[...]   # (S, D) f32

    # ---- residual + LayerNorm1 (f32 on the VPU) ----
    x1 = layer_norm(x + attn, g1_ref[...], be1_ref[...])

    # ---- feed-forward (relu); dropout = identity (eval mode) ----
    h1 = jnp.maximum(mm(x1, w1_ref[...]) + b1_ref[...], 0.0)
    h2 = mm(h1, w2_ref[...]) + b2_ref[...]

    # ---- residual + LayerNorm2 ----
    x2 = layer_norm(x1 + h2, g2_ref[...], be2_ref[...])

    o_ref[...] = x2.astype(o_ref.dtype)


# -----------------------------------------------------------------------------
# Wrapper: weight prep (per-head split / transpose / bf16 cast) + batch grid.
# -----------------------------------------------------------------------------
def transformer_encoder_layer(src, pos, params, *, nhead, eps=1e-5):
    """src, pos: (S, B, D) float32 (PyTorch MultiheadAttention layout)."""
    S, B, D = src.shape
    hd = D // nhead
    DFF = params["w1"].shape[0]
    bf16 = jnp.bfloat16

    # (S, B, D) -> (B, S, D) so each grid step owns one contiguous sequence.
    x_bsd = jnp.transpose(src, (1, 0, 2))
    p_bsd = jnp.transpose(pos, (1, 0, 2))

    # --- per-head weight layout (prepared once in the wrapper, bf16) ---
    in_w = params["in_proj_w"]                      # (3D, D) = [Wq; Wk; Wv]
    in_b = params["in_proj_b"]                      # (1, 3D)

    def per_head(w):                                # (D, D) -> (H, D, hd) = W.T split
        return jnp.transpose(w.reshape(nhead, hd, D), (0, 2, 1))

    wq3 = per_head(in_w[:D])
    wk3 = per_head(in_w[D:2 * D])
    wqk3 = jnp.concatenate([wq3, wk3], axis=0).astype(bf16)      # (2H, D, hd)
    wv3 = per_head(in_w[2 * D:]).astype(bf16)                    # (H, D, hd)
    bqk3 = in_b[0, :2 * D].reshape(2 * nhead, 1, hd)             # (2H, 1, hd) f32
    bv3 = in_b[0, 2 * D:].reshape(nhead, 1, hd)                  # (H, 1, hd) f32
    wo3 = jnp.transpose(params["out_proj_w"]).reshape(
        nhead, hd, D).astype(bf16)                               # (H, hd, D)
    w1_t = jnp.transpose(params["w1"]).astype(bf16)              # (D, DFF)
    w2_t = jnp.transpose(params["w2"]).astype(bf16)              # (DFF, D)

    kernel = functools.partial(_encoder_layer_kernel,
                               nhead=nhead, head_dim=hd, eps=eps)

    seq_spec = pl.BlockSpec((None, S, D), lambda b: (b, 0, 0))
    resident2 = lambda b: (0, 0)         # weights: constant index_map -> stay in VMEM
    resident3 = lambda b: (0, 0, 0)

    out_bsd = pl.pallas_call(
        kernel,
        out_shape=jax.ShapeDtypeStruct((B, S, D), src.dtype),
        grid_spec=pltpu.PrefetchScalarGridSpec(
            num_scalar_prefetch=0,
            grid=(B,),
            in_specs=[
                seq_spec,                                           # x
                seq_spec,                                           # pos
                pl.BlockSpec((2 * nhead, D, hd), resident3),        # wqk3
                pl.BlockSpec((2 * nhead, 1, hd), resident3),        # bqk3
                pl.BlockSpec((nhead, D, hd), resident3),            # wv3
                pl.BlockSpec((nhead, 1, hd), resident3),            # bv3
                pl.BlockSpec((nhead, hd, D), resident3),            # wo3
                pl.BlockSpec((1, D), resident2),                    # out_proj_b
                pl.BlockSpec((D, DFF), resident2),                  # w1_t
                pl.BlockSpec((1, DFF), resident2),                  # b1
                pl.BlockSpec((DFF, D), resident2),                  # w2_t
                pl.BlockSpec((1, D), resident2),                    # b2
                pl.BlockSpec((1, D), resident2),                    # g1
                pl.BlockSpec((1, D), resident2),                    # be1
                pl.BlockSpec((1, D), resident2),                    # g2
                pl.BlockSpec((1, D), resident2),                    # be2
            ],
            out_specs=pl.BlockSpec((None, S, D), lambda b: (b, 0, 0)),
        ),
        compiler_params=pltpu.CompilerParams(
            dimension_semantics=("parallel",),      # shards batch across TCs on v7x
            vmem_limit_bytes=32 * 1024 * 1024),
    )(x_bsd, p_bsd, wqk3, bqk3, wv3, bv3, wo3, params["out_proj_b"],
      w1_t, params["b1"], w2_t, params["b2"],
      params["g1"], params["be1"], params["g2"], params["be2"])

    return jnp.transpose(out_bsd, (1, 0, 2))        # back to (S, B, D)


# -----------------------------------------------------------------------------
# Pure-JAX f32 reference (mirrors PyTorch forward_post, eval mode)
# -----------------------------------------------------------------------------
def reference(src, pos, params, *, nhead, eps=1e-5):
    S, B, D = src.shape
    hd = D // nhead

    def ln(x, g, b):
        mu = jnp.mean(x, axis=-1, keepdims=True)
        var = jnp.mean((x - mu) ** 2, axis=-1, keepdims=True)
        return (x - mu) / jnp.sqrt(var + eps) * g + b

    x = jnp.transpose(src, (1, 0, 2))             # (B, S, D)
    p = jnp.transpose(pos, (1, 0, 2))
    q_in = x + p
    Wq, Wk, Wv = jnp.split(params["in_proj_w"], 3, axis=0)
    bq, bk, bv = jnp.split(params["in_proj_b"][0], 3)
    Q = q_in @ Wq.T + bq
    K = q_in @ Wk.T + bk
    V = x @ Wv.T + bv
    Qh = Q.reshape(B, S, nhead, hd).transpose(0, 2, 1, 3)
    Kh = K.reshape(B, S, nhead, hd).transpose(0, 2, 1, 3)
    Vh = V.reshape(B, S, nhead, hd).transpose(0, 2, 1, 3)
    s = jnp.einsum("bhqd,bhkd->bhqk", Qh, Kh) / jnp.sqrt(float(hd))
    a = jax.nn.softmax(s, axis=-1)
    o = jnp.einsum("bhqk,bhkd->bhqd", a, Vh).transpose(0, 2, 1, 3).reshape(B, S, D)
    o = o @ params["out_proj_w"].T + params["out_proj_b"][0]
    x1 = ln(x + o, params["g1"][0], params["be1"][0])
    h = jnp.maximum(x1 @ params["w1"].T + params["b1"][0], 0.0)
    h = h @ params["w2"].T + params["b2"][0]
    x2 = ln(x1 + h, params["g2"][0], params["be2"][0])
    return jnp.transpose(x2, (1, 0, 2))


# -----------------------------------------------------------------------------
# Main
# -----------------------------------------------------------------------------
if __name__ == "__main__":
    # Small shapes consistent with the module: seq=8, batch=2, d_model=32,
    # nhead=4, dim_feedforward=64.
    S, B, D = 8, 2, 32
    NHEAD, DFF = 4, 64

    root = jax.random.PRNGKey(0)
    ks = jax.random.split(root, 10)

    params = {
        "in_proj_w":  0.05 * jax.random.normal(ks[0], (3 * D, D), jnp.float32),
        "in_proj_b":  0.01 * jax.random.normal(ks[1], (1, 3 * D), jnp.float32),
        "out_proj_w": 0.05 * jax.random.normal(ks[2], (D, D), jnp.float32),
        "out_proj_b": 0.01 * jax.random.normal(ks[3], (1, D), jnp.float32),
        "w1":         0.05 * jax.random.normal(ks[4], (DFF, D), jnp.float32),
        "b1":         0.01 * jax.random.normal(ks[5], (1, DFF), jnp.float32),
        "w2":         0.05 * jax.random.normal(ks[6], (D, DFF), jnp.float32),
        "b2":         0.01 * jax.random.normal(ks[7], (1, D), jnp.float32),
        "g1":  jnp.ones((1, D), jnp.float32),
        "be1": jnp.zeros((1, D), jnp.float32),
        "g2":  jnp.ones((1, D), jnp.float32),
        "be2": jnp.zeros((1, D), jnp.float32),
    }

    src = jax.random.normal(ks[8], (S, B, D), jnp.float32)
    pos = jax.random.normal(ks[9], (S, B, D), jnp.float32)

    out = jax.block_until_ready(
        transformer_encoder_layer(src, pos, params, nhead=NHEAD))
    ref = jax.block_until_ready(reference(src, pos, params, nhead=NHEAD))

    assert out.shape == (S, B, D)
    # bf16 MXU operands + approx reciprocal vs. f32 reference -> looser tol
    # (deliberate accuracy/perf trade, documented above).
    np.testing.assert_allclose(np.asarray(out), np.asarray(ref),
                               atol=2e-2, rtol=2e-2)
    print("KERNEL_OK")
</pallas_src>

<mosaic_0001>
module attributes {stable_mosaic.version = 11 : i64} {
  func.func @_encoder_layer_kernel(%arg0: i32, %arg1: memref<1x8x32xf32, #tpu.memory_space<vmem>>, %arg2: memref<1x8x32xf32, #tpu.memory_space<vmem>>, %arg3: memref<8x32x8xbf16, #tpu.memory_space<vmem>>, %arg4: memref<8x1x8xf32, #tpu.memory_space<vmem>>, %arg5: memref<4x32x8xbf16, #tpu.memory_space<vmem>>, %arg6: memref<4x1x8xf32, #tpu.memory_space<vmem>>, %arg7: memref<4x8x32xbf16, #tpu.memory_space<vmem>>, %arg8: memref<1x32xf32, #tpu.memory_space<vmem>>, %arg9: memref<32x64xbf16, #tpu.memory_space<vmem>>, %arg10: memref<1x64xf32, #tpu.memory_space<vmem>>, %arg11: memref<64x32xbf16, #tpu.memory_space<vmem>>, %arg12: memref<1x32xf32, #tpu.memory_space<vmem>>, %arg13: memref<1x32xf32, #tpu.memory_space<vmem>>, %arg14: memref<1x32xf32, #tpu.memory_space<vmem>>, %arg15: memref<1x32xf32, #tpu.memory_space<vmem>>, %arg16: memref<1x32xf32, #tpu.memory_space<vmem>>, %arg17: memref<1x8x32xf32, #tpu.memory_space<vmem>>) attributes {dimension_semantics = [#tpu.dimension_semantics<parallel>], iteration_bounds = array<i64: 2>, scalar_prefetch = 0 : i64, scratch_operands = 0 : i64, tpu.core_type = #tpu.core_type<tc>, window_params = [{transform_indices = @transform_0, window_bounds = array<i64: 1, 8, 32>}, {transform_indices = @transform_1, window_bounds = array<i64: 1, 8, 32>}, {pipeline_mode = #tpu.pipeline_mode<synchronous>, transform_indices = @transform_2, window_bounds = array<i64: 8, 32, 8>}, {pipeline_mode = #tpu.pipeline_mode<synchronous>, transform_indices = @transform_3, window_bounds = array<i64: 8, 1, 8>}, {pipeline_mode = #tpu.pipeline_mode<synchronous>, transform_indices = @transform_4, window_bounds = array<i64: 4, 32, 8>}, {pipeline_mode = #tpu.pipeline_mode<synchronous>, transform_indices = @transform_5, window_bounds = array<i64: 4, 1, 8>}, {pipeline_mode = #tpu.pipeline_mode<synchronous>, transform_indices = @transform_6, window_bounds = array<i64: 4, 8, 32>}, {pipeline_mode = #tpu.pipeline_mode<synchronous>, transform_indices = @transform_7, window_bounds = array<i64: 1, 32>}, {pipeline_mode = #tpu.pipeline_mode<synchronous>, transform_indices = @transform_8, window_bounds = array<i64: 32, 64>}, {pipeline_mode = #tpu.pipeline_mode<synchronous>, transform_indices = @transform_9, window_bounds = array<i64: 1, 64>}, {pipeline_mode = #tpu.pipeline_mode<synchronous>, transform_indices = @transform_10, window_bounds = array<i64: 64, 32>}, {pipeline_mode = #tpu.pipeline_mode<synchronous>, transform_indices = @transform_11, window_bounds = array<i64: 1, 32>}, {pipeline_mode = #tpu.pipeline_mode<synchronous>, transform_indices = @transform_12, window_bounds = array<i64: 1, 32>}, {pipeline_mode = #tpu.pipeline_mode<synchronous>, transform_indices = @transform_13, window_bounds = array<i64: 1, 32>}, {pipeline_mode = #tpu.pipeline_mode<synchronous>, transform_indices = @transform_14, window_bounds = array<i64: 1, 32>}, {pipeline_mode = #tpu.pipeline_mode<synchronous>, transform_indices = @transform_15, window_bounds = array<i64: 1, 32>}, {transform_indices = @transform_16, window_bounds = array<i64: 1, 8, 32>}]} {
    %c0 = arith.constant 0 : index
    %c0_0 = arith.constant 0 : index
    %c0_1 = arith.constant 0 : index
    %0 = vector.load %arg1[%c0, %c0_0, %c0_1] : memref<1x8x32xf32, #tpu.memory_space<vmem>>, vector<1x8x32xf32>
    %1 = vector.shape_cast %0 : vector<1x8x32xf32> to vector<8x32xf32>
    %c0_2 = arith.constant 0 : index
    %c0_3 = arith.constant 0 : index
    %c0_4 = arith.constant 0 : index
    %2 = vector.load %arg2[%c0_2, %c0_3, %c0_4] : memref<1x8x32xf32, #tpu.memory_space<vmem>>, vector<1x8x32xf32>
    %3 = vector.shape_cast %2 : vector<1x8x32xf32> to vector<8x32xf32>
    %4 = arith.addf %1, %3 : vector<8x32xf32>
    %5 = arith.truncf %4 : vector<8x32xf32> to vector<8x32xbf16>
    %6 = arith.truncf %1 : vector<8x32xf32> to vector<8x32xbf16>
    %7 = vector.shape_cast %5 : vector<8x32xbf16> to vector<1x8x32xbf16>
    %8 = vector.shape_cast %7 : vector<1x8x32xbf16> to vector<1x8x32xbf16>
    %9 = vector.broadcast %8 : vector<1x8x32xbf16> to vector<8x8x32xbf16>
    %c0_5 = arith.constant 0 : index
    %c0_6 = arith.constant 0 : index
    %c0_7 = arith.constant 0 : index
    %10 = vector.load %arg3[%c0_5, %c0_6, %c0_7] : memref<8x32x8xbf16, #tpu.memory_space<vmem>>, vector<8x32x8xbf16>
    %cst = arith.constant dense<0.000000e+00> : vector<8x8x8xf32>
    %11 = tpu.matmul %9, %10, %cst {dimension_numbers = #tpu.dot_dimension_numbers<[2], [1], [1], [2], [0, 0, 0, 1, 1, 2], [0], [0]>} : vector<8x8x32xbf16>, vector<8x32x8xbf16>, vector<8x8x8xf32> -> vector<8x8x8xf32>
    %c0_8 = arith.constant 0 : index
    %c0_9 = arith.constant 0 : index
    %c0_10 = arith.constant 0 : index
    %12 = vector.load %arg4[%c0_8, %c0_9, %c0_10] : memref<8x1x8xf32, #tpu.memory_space<vmem>>, vector<8x1x8xf32>
    %13 = vector.broadcast %12 : vector<8x1x8xf32> to vector<8x8x8xf32>
    %14 = arith.addf %11, %13 : vector<8x8x8xf32>
    %15 = vector.extract_strided_slice %14 {offsets = [0, 0, 0], sizes = [4, 8, 8], strides = [1, 1, 1]} : vector<8x8x8xf32> to vector<4x8x8xf32>
    %16 = vector.extract_strided_slice %14 {offsets = [4, 0, 0], sizes = [4, 8, 8], strides = [1, 1, 1]} : vector<8x8x8xf32> to vector<4x8x8xf32>
    %17 = vector.shape_cast %6 : vector<8x32xbf16> to vector<1x8x32xbf16>
    %18 = vector.shape_cast %17 : vector<1x8x32xbf16> to vector<1x8x32xbf16>
    %19 = vector.broadcast %18 : vector<1x8x32xbf16> to vector<4x8x32xbf16>
    %c0_11 = arith.constant 0 : index
    %c0_12 = arith.constant 0 : index
    %c0_13 = arith.constant 0 : index
    %20 = vector.load %arg5[%c0_11, %c0_12, %c0_13] : memref<4x32x8xbf16, #tpu.memory_space<vmem>>, vector<4x32x8xbf16>
    %cst_14 = arith.constant dense<0.000000e+00> : vector<4x8x8xf32>
    %21 = tpu.matmul %19, %20, %cst_14 {dimension_numbers = #tpu.dot_dimension_numbers<[2], [1], [1], [2], [0, 0, 0, 1, 1, 2], [0], [0]>} : vector<4x8x32xbf16>, vector<4x32x8xbf16>, vector<4x8x8xf32> -> vector<4x8x8xf32>
    %c0_15 = arith.constant 0 : index
    %c0_16 = arith.constant 0 : index
    %c0_17 = arith.constant 0 : index
    %22 = vector.load %arg6[%c0_15, %c0_16, %c0_17] : memref<4x1x8xf32, #tpu.memory_space<vmem>>, vector<4x1x8xf32>
    %23 = vector.broadcast %22 : vector<4x1x8xf32> to vector<4x8x8xf32>
    %24 = arith.addf %21, %23 : vector<4x8x8xf32>
    %25 = arith.truncf %15 : vector<4x8x8xf32> to vector<4x8x8xbf16>
    %26 = arith.truncf %16 : vector<4x8x8xf32> to vector<4x8x8xbf16>
    %cst_18 = arith.constant dense<0.000000e+00> : vector<4x8x8xf32>
    %27 = tpu.matmul %25, %26, %cst_18 {dimension_numbers = #tpu.dot_dimension_numbers<[2], [2], [1], [1], [0, 0, 0, 1, 1, 1], [0], [0]>} : vector<4x8x8xbf16>, vector<4x8x8xbf16>, vector<4x8x8xf32> -> vector<4x8x8xf32>
    %cst_19 = arith.constant 0.353553385 : f32
    %28 = vector.broadcast %cst_19 : f32 to vector<4x8x8xf32>
    %29 = arith.mulf %27, %28 : vector<4x8x8xf32>
    %cst_20 = arith.constant dense<0xFF800000> : vector<4x8xf32>
    %30 = vector.multi_reduction <maximumf>, %29, %cst_20 [2] : vector<4x8x8xf32> to vector<4x8xf32>
    %31 = vector.shape_cast %30 : vector<4x8xf32> to vector<4x8x1xf32>
    %32 = vector.broadcast %31 : vector<4x8x1xf32> to vector<4x8x8xf32>
    %33 = arith.subf %29, %32 : vector<4x8x8xf32>
    %34 = math.exp %33 : vector<4x8x8xf32>
    %cst_21 = arith.constant dense<0.000000e+00> : vector<4x8xf32>
    %35 = vector.multi_reduction <add>, %34, %cst_21 [2] : vector<4x8x8xf32> to vector<4x8xf32>
    %36 = vector.shape_cast %35 : vector<4x8xf32> to vector<4x8x1xf32>
    %37 = tpu.reciprocal %36 {approx = true} : vector<4x8x1xf32> -> vector<4x8x1xf32>
    %38 = vector.broadcast %37 : vector<4x8x1xf32> to vector<4x8x8xf32>
    %39 = arith.mulf %34, %38 : vector<4x8x8xf32>
    %40 = arith.truncf %39 : vector<4x8x8xf32> to vector<4x8x8xbf16>
    %41 = arith.truncf %24 : vector<4x8x8xf32> to vector<4x8x8xbf16>
    %cst_22 = arith.constant dense<0.000000e+00> : vector<4x8x8xf32>
    %42 = tpu.matmul %40, %41, %cst_22 {dimension_numbers = #tpu.dot_dimension_numbers<[2], [1], [1], [2], [0, 0, 0, 1, 1, 2], [0], [0]>} : vector<4x8x8xbf16>, vector<4x8x8xbf16>, vector<4x8x8xf32> -> vector<4x8x8xf32>
    %c0_23 = arith.constant 0 : index
    %c0_24 = arith.constant 0 : index
    %c0_25 = arith.constant 0 : index
    %43 = vector.load %arg7[%c0_23, %c0_24, %c0_25] : memref<4x8x32xbf16, #tpu.memory_space<vmem>>, vector<4x8x32xbf16>
    %44 = arith.truncf %42 : vector<4x8x8xf32> to vector<4x8x8xbf16>
    %cst_26 = arith.constant dense<0.000000e+00> : vector<4x8x32xf32>
    %45 = tpu.matmul %44, %43, %cst_26 {dimension_numbers = #tpu.dot_dimension_numbers<[2], [1], [1], [2], [0, 0, 0, 1, 1, 2], [0], [0]>} : vector<4x8x8xbf16>, vector<4x8x32xbf16>, vector<4x8x32xf32> -> vector<4x8x32xf32>
    %cst_27 = arith.constant dense<0.000000e+00> : vector<8x32xf32>
    %46 = vector.multi_reduction <add>, %45, %cst_27 [0] : vector<4x8x32xf32> to vector<8x32xf32>
    %c0_28 = arith.constant 0 : index
    %c0_29 = arith.constant 0 : index
    %47 = vector.load %arg8[%c0_28, %c0_29] : memref<1x32xf32, #tpu.memory_space<vmem>>, vector<1x32xf32>
    %48 = vector.broadcast %47 : vector<1x32xf32> to vector<8x32xf32>
    %49 = arith.addf %46, %48 : vector<8x32xf32>
    %50 = arith.addf %1, %49 : vector<8x32xf32>
    %c0_30 = arith.constant 0 : index
    %c0_31 = arith.constant 0 : index
    %51 = vector.load %arg13[%c0_30, %c0_31] : memref<1x32xf32, #tpu.memory_space<vmem>>, vector<1x32xf32>
    %c0_32 = arith.constant 0 : index
    %c0_33 = arith.constant 0 : index
    %52 = vector.load %arg14[%c0_32, %c0_33] : memref<1x32xf32, #tpu.memory_space<vmem>>, vector<1x32xf32>
    %cst_34 = arith.constant dense<0.000000e+00> : vector<8xf32>
    %53 = vector.multi_reduction <add>, %50, %cst_34 [1] : vector<8x32xf32> to vector<8xf32>
    %54 = vector.shape_cast %53 : vector<8xf32> to vector<8x1xf32>
    %cst_35 = arith.constant 3.200000e+01 : f32
    %55 = vector.broadcast %cst_35 : f32 to vector<8x1xf32>
    %56 = arith.divf %54, %55 : vector<8x1xf32>
    %57 = vector.broadcast %56 : vector<8x1xf32> to vector<8x32xf32>
    %58 = arith.subf %50, %57 : vector<8x32xf32>
    %59 = arith.mulf %58, %58 : vector<8x32xf32>
    %cst_36 = arith.constant dense<0.000000e+00> : vector<8xf32>
    %60 = vector.multi_reduction <add>, %59, %cst_36 [1] : vector<8x32xf32> to vector<8xf32>
    %61 = vector.shape_cast %60 : vector<8xf32> to vector<8x1xf32>
    %cst_37 = arith.constant 3.200000e+01 : f32
    %62 = vector.broadcast %cst_37 : f32 to vector<8x1xf32>
    %63 = arith.divf %61, %62 : vector<8x1xf32>
    %cst_38 = arith.constant 9.99999974E-6 : f32
    %64 = vector.broadcast %cst_38 : f32 to vector<8x1xf32>
    %65 = arith.addf %63, %64 : vector<8x1xf32>
    %66 = math.rsqrt %65 : vector<8x1xf32>
    %67 = vector.broadcast %66 : vector<8x1xf32> to vector<8x32xf32>
    %68 = arith.mulf %58, %67 : vector<8x32xf32>
    %69 = vector.broadcast %51 : vector<1x32xf32> to vector<8x32xf32>
    %70 = arith.mulf %68, %69 : vector<8x32xf32>
    %71 = vector.broadcast %52 : vector<1x32xf32> to vector<8x32xf32>
    %72 = arith.addf %70, %71 : vector<8x32xf32>
    %c0_39 = arith.constant 0 : index
    %c0_40 = arith.constant 0 : index
    %73 = vector.load %arg9[%c0_39, %c0_40] : memref<32x64xbf16, #tpu.memory_space<vmem>>, vector<32x64xbf16>
    %74 = arith.truncf %72 : vector<8x32xf32> to vector<8x32xbf16>
    %cst_41 = arith.constant dense<0.000000e+00> : vector<8x64xf32>
    %75 = tpu.matmul %74, %73, %cst_41 {dimension_numbers = #tpu.dot_dimension_numbers<[1], [0], [0], [1], [0, 0, 1, 1], [], []>} : vector<8x32xbf16>, vector<32x64xbf16>, vector<8x64xf32> -> vector<8x64xf32>
    %c0_42 = arith.constant 0 : index
    %c0_43 = arith.constant 0 : index
    %76 = vector.load %arg10[%c0_42, %c0_43] : memref<1x64xf32, #tpu.memory_space<vmem>>, vector<1x64xf32>
    %77 = vector.broadcast %76 : vector<1x64xf32> to vector<8x64xf32>
    %78 = arith.addf %75, %77 : vector<8x64xf32>
    %cst_44 = arith.constant 0.000000e+00 : f32
    %79 = vector.broadcast %cst_44 : f32 to vector<8x64xf32>
    %80 = arith.maximumf %78, %79 : vector<8x64xf32>
    %c0_45 = arith.constant 0 : index
    %c0_46 = arith.constant 0 : index
    %81 = vector.load %arg11[%c0_45, %c0_46] : memref<64x32xbf16, #tpu.memory_space<vmem>>, vector<64x32xbf16>
    %82 = arith.truncf %80 : vector<8x64xf32> to vector<8x64xbf16>
    %cst_47 = arith.constant dense<0.000000e+00> : vector<8x32xf32>
    %83 = tpu.matmul %82, %81, %cst_47 {dimension_numbers = #tpu.dot_dimension_numbers<[1], [0], [0], [1], [0, 0, 1, 1], [], []>} : vector<8x64xbf16>, vector<64x32xbf16>, vector<8x32xf32> -> vector<8x32xf32>
    %c0_48 = arith.constant 0 : index
    %c0_49 = arith.constant 0 : index
    %84 = vector.load %arg12[%c0_48, %c0_49] : memref<1x32xf32, #tpu.memory_space<vmem>>, vector<1x32xf32>
    %85 = vector.broadcast %84 : vector<1x32xf32> to vector<8x32xf32>
    %86 = arith.addf %83, %85 : vector<8x32xf32>
    %87 = arith.addf %72, %86 : vector<8x32xf32>
    %c0_50 = arith.constant 0 : index
    %c0_51 = arith.constant 0 : index
    %88 = vector.load %arg15[%c0_50, %c0_51] : memref<1x32xf32, #tpu.memory_space<vmem>>, vector<1x32xf32>
    %c0_52 = arith.constant 0 : index
    %c0_53 = arith.constant 0 : index
    %89 = vector.load %arg16[%c0_52, %c0_53] : memref<1x32xf32, #tpu.memory_space<vmem>>, vector<1x32xf32>
    %cst_54 = arith.constant dense<0.000000e+00> : vector<8xf32>
    %90 = vector.multi_reduction <add>, %87, %cst_54 [1] : vector<8x32xf32> to vector<8xf32>
    %91 = vector.shape_cast %90 : vector<8xf32> to vector<8x1xf32>
    %cst_55 = arith.constant 3.200000e+01 : f32
    %92 = vector.broadcast %cst_55 : f32 to vector<8x1xf32>
    %93 = arith.divf %91, %92 : vector<8x1xf32>
    %94 = vector.broadcast %93 : vector<8x1xf32> to vector<8x32xf32>
    %95 = arith.subf %87, %94 : vector<8x32xf32>
    %96 = arith.mulf %95, %95 : vector<8x32xf32>
    %cst_56 = arith.constant dense<0.000000e+00> : vector<8xf32>
    %97 = vector.multi_reduction <add>, %96, %cst_56 [1] : vector<8x32xf32> to vector<8xf32>
    %98 = vector.shape_cast %97 : vector<8xf32> to vector<8x1xf32>
    %cst_57 = arith.constant 3.200000e+01 : f32
    %99 = vector.broadcast %cst_57 : f32 to vector<8x1xf32>
    %100 = arith.divf %98, %99 : vector<8x1xf32>
    %cst_58 = arith.constant 9.99999974E-6 : f32
    %101 = vector.broadcast %cst_58 : f32 to vector<8x1xf32>
    %102 = arith.addf %100, %101 : vector<8x1xf32>
    %103 = math.rsqrt %102 : vector<8x1xf32>
    %104 = vector.broadcast %103 : vector<8x1xf32> to vector<8x32xf32>
    %105 = arith.mulf %95, %104 : vector<8x32xf32>
    %106 = vector.broadcast %88 : vector<1x32xf32> to vector<8x32xf32>
    %107 = arith.mulf %105, %106 : vector<8x32xf32>
    %108 = vector.broadcast %89 : vector<1x32xf32> to vector<8x32xf32>
    %109 = arith.addf %107, %108 : vector<8x32xf32>
    %c0_59 = arith.constant 0 : index
    %c0_60 = arith.constant 0 : index
    %c0_61 = arith.constant 0 : index
    %110 = vector.load %arg17[%c0_59, %c0_60, %c0_61] : memref<1x8x32xf32, #tpu.memory_space<vmem>>, vector<1x8x32xf32>
    %111 = vector.shape_cast %110 : vector<1x8x32xf32> to vector<8x32xf32>
    %112 = vector.shape_cast %109 : vector<8x32xf32> to vector<1x8x32xf32>
    tpu.vector_store %arg17[%c0_59, %c0_60, %c0_61], %112 {strides = array<i32>} : memref<1x8x32xf32, #tpu.memory_space<vmem>>, vector<1x8x32xf32>,
    return
  }
  func.func @transform_0(%arg0: i32) -> (i32, i32, i32) {
    %c0_i32 = arith.constant 0 : i32
    %c0_i32_0 = arith.constant 0 : i32
    %c0_i32_1 = arith.constant 0 : i32
    return %arg0, %c0_i32, %c0_i32_0 : i32, i32, i32
  }
  func.func @transform_1(%arg0: i32) -> (i32, i32, i32) {
    %c0_i32 = arith.constant 0 : i32
    %c0_i32_0 = arith.constant 0 : i32
    %c0_i32_1 = arith.constant 0 : i32
    return %arg0, %c0_i32, %c0_i32_0 : i32, i32, i32
  }
  func.func @transform_2(%arg0: i32) -> (i32, i32, i32) {
    %c0_i32 = arith.constant 0 : i32
    %c0_i32_0 = arith.constant 0 : i32
    %c0_i32_1 = arith.constant 0 : i32
    %c0_i32_2 = arith.constant 0 : i32
    return %c0_i32, %c0_i32_0, %c0_i32_1 : i32, i32, i32
  }
  func.func @transform_3(%arg0: i32) -> (i32, i32, i32) {
    %c0_i32 = arith.constant 0 : i32
    %c0_i32_0 = arith.constant 0 : i32
    %c0_i32_1 = arith.constant 0 : i32
    %c0_i32_2 = arith.constant 0 : i32
    return %c0_i32, %c0_i32_0, %c0_i32_1 : i32, i32, i32
  }
  func.func @transform_4(%arg0: i32) -> (i32, i32, i32) {
    %c0_i32 = arith.constant 0 : i32
    %c0_i32_0 = arith.constant 0 : i32
    %c0_i32_1 = arith.constant 0 : i32
    %c0_i32_2 = arith.constant 0 : i32
    return %c0_i32, %c0_i32_0, %c0_i32_1 : i32, i32, i32
  }
  func.func @transform_5(%arg0: i32) -> (i32, i32, i32) {
    %c0_i32 = arith.constant 0 : i32
    %c0_i32_0 = arith.constant 0 : i32
    %c0_i32_1 = arith.constant 0 : i32
    %c0_i32_2 = arith.constant 0 : i32
    return %c0_i32, %c0_i32_0, %c0_i32_1 : i32, i32, i32
  }
  func.func @transform_6(%arg0: i32) -> (i32, i32, i32) {
    %c0_i32 = arith.constant 0 : i32
    %c0_i32_0 = arith.constant 0 : i32
    %c0_i32_1 = arith.constant 0 : i32
    %c0_i32_2 = arith.constant 0 : i32
    return %c0_i32, %c0_i32_0, %c0_i32_1 : i32, i32, i32
  }
  func.func @transform_7(%arg0: i32) -> (i32, i32) {
    %c0_i32 = arith.constant 0 : i32
    %c0_i32_0 = arith.constant 0 : i32
    %c0_i32_1 = arith.constant 0 : i32
    return %c0_i32, %c0_i32_0 : i32, i32
  }
  func.func @transform_8(%arg0: i32) -> (i32, i32) {
    %c0_i32 = arith.constant 0 : i32
    %c0_i32_0 = arith.constant 0 : i32
    %c0_i32_1 = arith.constant 0 : i32
    return %c0_i32, %c0_i32_0 : i32, i32
  }
  func.func @transform_9(%arg0: i32) -> (i32, i32) {
    %c0_i32 = arith.constant 0 : i32
    %c0_i32_0 = arith.constant 0 : i32
    %c0_i32_1 = arith.constant 0 : i32
    return %c0_i32, %c0_i32_0 : i32, i32
  }
  func.func @transform_10(%arg0: i32) -> (i32, i32) {
    %c0_i32 = arith.constant 0 : i32
    %c0_i32_0 = arith.constant 0 : i32
    %c0_i32_1 = arith.constant 0 : i32
    return %c0_i32, %c0_i32_0 : i32, i32
  }
  func.func @transform_11(%arg0: i32) -> (i32, i32) {
    %c0_i32 = arith.constant 0 : i32
    %c0_i32_0 = arith.constant 0 : i32
    %c0_i32_1 = arith.constant 0 : i32
    return %c0_i32, %c0_i32_0 : i32, i32
  }
  func.func @transform_12(%arg0: i32) -> (i32, i32) {
    %c0_i32 = arith.constant 0 : i32
    %c0_i32_0 = arith.constant 0 : i32
    %c0_i32_1 = arith.constant 0 : i32
    return %c0_i32, %c0_i32_0 : i32, i32
  }
  func.func @transform_13(%arg0: i32) -> (i32, i32) {
    %c0_i32 = arith.constant 0 : i32
    %c0_i32_0 = arith.constant 0 : i32
    %c0_i32_1 = arith.constant 0 : i32
    return %c0_i32, %c0_i32_0 : i32, i32
  }
  func.func @transform_14(%arg0: i32) -> (i32, i32) {
    %c0_i32 = arith.constant 0 : i32
    %c0_i32_0 = arith.constant 0 : i32
    %c0_i32_1 = arith.constant 0 : i32
    return %c0_i32, %c0_i32_0 : i32, i32
  }
  func.func @transform_15(%arg0: i32) -> (i32, i32) {
    %c0_i32 = arith.constant 0 : i32
    %c0_i32_0 = arith.constant 0 : i32
    %c0_i32_1 = arith.constant 0 : i32
    return %c0_i32, %c0_i32_0 : i32, i32
  }
  func.func @transform_16(%arg0: i32) -> (i32, i32, i32) {
    %c0_i32 = arith.constant 0 : i32
    %c0_i32_0 = arith.constant 0 : i32
    %c0_i32_1 = arith.constant 0 : i32
    return %arg0, %c0_i32, %c0_i32_0 : i32, i32, i32
  }
}

</mosaic_0001>

<bundles_post_ra>
// kernel: tpu_custom_call.1
= control target key start
LH: loop header
LB: loop body
LE: loop exit
PB: predicated region body
PF: predicated region fallthrough
CT: control target
= control target key end

     0   :  { %s2235_s0 = inlined_call_operand.vmem [shape: f32[2,8,32], index: 0, kind: input, shape index: {}]   ;;  %s2236_s1 = inlined_call_operand.vmem [shape: f32[2,8,32], index: 1, kind: input, shape index: {}]   ;;  %s2237_s2 = inlined_call_operand.vmem [shape: bf16[8,32,8], index: 2, kind: input, shape index: {}]   ;;  %s2238_s3 = inlined_call_operand.vmem [shape: f32[8,1,8], index: 3, kind: input, shape index: {}]   ;;  %s2239_s4 = inlined_call_operand.vmem [shape: bf16[4,32,8], index: 4, kind: input, shape index: {}]   ;;  %s2240_s5 = inlined_call_operand.vmem [shape: f32[4,1,8], index: 5, kind: input, shape index: {}]   ;;  %s2241_s6 = inlined_call_operand.vmem [shape: bf16[4,8,32], index: 6, kind: input, shape index: {}]   ;;  %s2242_s7 = inlined_call_operand.vmem [shape: f32[1,32], index: 7, kind: input, shape index: {}]   ;;  %s2243_s8 = inlined_call_operand.vmem [shape: bf16[32,64], index: 8, kind: input, shape index: {}]   ;;  %s2244_s9 = inlined_call_operand.vmem [shape: f32[1,64], index: 9, kind: input, shape index: {}]   ;;  %s2245_s10 = inlined_call_operand.vmem [shape: bf16[64,32], index: 10, kind: input, shape index: {}]   ;;  %s2246_s11 = inlined_call_operand.vmem [shape: f32[1,32], index: 11, kind: input, shape index: {}]   ;;  %s2247_s12 = inlined_call_operand.vmem [shape: f32[1,32], index: 12, kind: input, shape index: {}]   ;;  %s2248_s13 = inlined_call_operand.vmem [shape: f32[1,32], index: 13, kind: input, shape index: {}]   ;;  %s2249_s14 = inlined_call_operand.vmem [shape: f32[1,32], index: 14, kind: input, shape index: {}]   ;;  %s2250_s15 = inlined_call_operand.vmem [shape: f32[1,32], index: 15, kind: input, shape index: {}]   ;;  %s2251_s16 = inlined_call_operand.hbm [shape: f32[2,8,32], index: 16, kind: output, shape index: {}]  }
   0x1   :  { %2261 = sst [smem:[#allocation12_spill]] %s2235_s0 }
   0x2   :  { %2262 = sst [smem:[#allocation13_spill]] %s2249_s14 }
   0x3   :  { %2263 = sst [smem:[#allocation14_spill]] %s2250_s15 }
   0x4   :  { %2264 = sst [smem:[#allocation15_spill]] %s2251_s16 }
   0x5   :  { %21 = vsyncpa [#allocation3], 0 }
   0x6   :  { %23 = vsyncpa [#allocation3 + $0x1], 0  ;;  %s1928_s21 = smov 0   ;;  %s1930_s22 = smov 0  }
   0x7   :  { %s1932_s23 = smov 0   ;;  %s1934_s24 = smov 0  }
   0x8 LB: > { %2265 = sst [smem:[#allocation5_spill]] %s1828_s21  ;;  %s1949_s25 = sadd.s32 4294967295, %s1840_s24   ;;  %s1840_s24 = sphi %s1934_s24, %s2282_s24   ;;  %s1836_s23 = sphi %s1932_s23, %s2284_s23   ;;  %s1832_s22 = sphi %s1930_s22, %s2286_s22   ;;  %s1828_s21 = sphi %s1928_s21, %s2285_s21  }
   0x9   : > { %2266 = sst [smem:[#allocation6_spill]] %s1836_s23  ;;  %s1510_s26 = sadd.s32 4294967294, %s1840_s24  }
   0xa   : > { %2267 = sst [smem:[#allocation7_spill]] %s1840_s24  ;;  %s1953_s27 = sadd.s32 1, %s1840_s24  }
   0xb   : > { %2268 = sst [smem:[#allocation8_spill]] %s1953_s27  ;;  %s382_s28 = sadd.s32 1, %s1836_s23 }
   0xc   : > { %s379_s29 = ssub.s32 %s1840_s24, %s1953_s27  ;;  %p392_p0 = scmp.ne.s32.totalorder %s1836_s23, %s1832_s22 }
   0xd   : > { %p380_p1 = scmp.eq.s32.totalorder %s379_s29, 0  ;;  %p393_p2 = scmp.eq.s32.totalorder %s1949_s25, 1 }
   0xe   : > { %p398_p3 = scmp.ne.s32.totalorder %s1832_s22, %s1828_s21  ;;  %p399_p4 = scmp.eq.s32.totalorder %s1510_s26, 1 }
   0xf   : > { %s1964_s30 = scalar_select %p380_p1, %s1836_s23, %s382_s28  }
  0x10   : > { %p1966_p5 = por %p393_p2, %p392_p0  ;;  %p1970_p6 = por %p399_p4, %p398_p3 }
  0x11   : > { %2269 = sst [smem:[#allocation9_spill]] %s1964_s30  ;;  %p1513_p7 = scmp.ge.s32.totalorder %s1840_s24, 1 }
  0x12   : > { %s2270_s0 = scalar_select %p1966_p5, 1, 0 }
  0x13   : > { %s2272_s17 = scalar_select %p1970_p6, 1, 0 }
  0x14   : > { %2271 = sst [smem:[#allocation10_spill]] %s2270_s0  ;;  %p473_p8 = scmp.lt.s32.totalorder %s1840_s24, 3 }
  0x15   : > { %2273 = sst [smem:[#allocation11_spill]] %s2272_s17 }
  0x16   : > { %p474_p9 = pnand %p1513_p7, %p473_p8 }
  0x17   : > { %p526_p10 = scmp.lt.s32.totalorder (!%p474_p9), %s1949_s25, 1  ;;  %s2274_s15 = sld [smem:[#allocation12_spill]] (!%p474_p9) }
  0x18   : > { %477 = sbr.rel (%p474_p9) target bundleno = 1675 (0x68b), region = 84  ;;  %s2275_s21 = sld [smem:[#allocation13_spill]] (!%p474_p9) }
  0x19   : > { %s2278_s26 = sld [smem:[#allocation14_spill]] (!%p474_p9) }
  0x1d   : > { %v1668_v0 = vld [vmem:[%s2237_s2 + $0x8] sm:$0xff]  ;;  %v1670_v1 = vld [vmem:[%s2237_s2 + $0x18] sm:$0xff]  ;;  %v1667_v4 = vld [vmem:[%s2237_s2] sm:$0xff]  ;;  %s527_s20 = scalar_select %p526_p10, %s1949_s25, 1  ;;  %vm616_vm0 = vcmask 261120   ;;  %vm951_vm1 = vcmask 64512  }
  0x1e   : > { %v1672_v2 = vld [vmem:[%s2237_s2 + $0x28] sm:$0xff]  ;;  %v1674_v3 = vld [vmem:[%s2237_s2 + $0x38] sm:$0xff]  ;;  %626 = vmatpush.bf16.msra.mxu0 %v1668_v0  ;;  %651 = vmatpush.bf16.msra.mxu1 %v1670_v1  ;;  %v1669_v5 = vld [vmem:[%s2237_s2 + $0x10] sm:$0xff]  ;;  %vm1087_vm2 = vcmask 1043456   ;;  %vm1372_vm7 = vcmask 523264  }
  0x1f   : > { %676 = vmatpush.bf16.msra.mxu2 %v1672_v2  ;;  %701 = vmatpush.bf16.msra.mxu3 %v1674_v3  ;;  %v1671_v6 = vld [vmem:[%s2237_s2 + $0x20] sm:$0xff]  ;;  %v1673_v7 = vld [vmem:[%s2237_s2 + $0x30] sm:$0xff]  ;;  %s1515_s30 = sshll.u32 %s527_s20, 3  ;;  %v1676_v8 = vld [vmem:[%s2237_s2 + $0x48] sm:$0xff]  ;;  %s523_s20 = sand.u32 1, %s1832_s22  }
  0x20   : > { %v1678_v9 = vld [vmem:[%s2237_s2 + $0x58] sm:$0xff]  ;;  %s529_s0 = scalar_lea.vmem %s2274_s15, %s1515_s30  ;;  %s533_s28 = scalar_lea.vmem %s2236_s1, %s1515_s30  ;;  %v1680_v10 = vld [vmem:[%s2237_s2 + $0x68] sm:$0xff]  ;;  %v1675_v15 = vld [vmem:[%s2237_s2 + $0x40] sm:$0xff] }
  0x21   : > { %v1682_v11 = vld [vmem:[%s2237_s2 + $0x78] sm:$0xff]  ;;  %v2020_v12 = vld [vmem:[%s529_s0] sm:$0xff]  ;;  %v1677_v16 = vld [vmem:[%s2237_s2 + $0x50] sm:$0xff]  ;;  %s1514_s23 = sshll.u32 %s523_s20, 3  ;;  %s1664_s15 = sshll.u32 %s1949_s25, 3 }
  0x22   : > { %627 = vmatpush.bf16.msra.mxu0 %v1667_v4  ;;  %652 = vmatpush.bf16.msra.mxu1 %v1669_v5  ;;  %v536_v13 = vld [vmem:[%s533_s28] sm:$0xff]  ;;  %v1681_v18 = vld [vmem:[%s2237_s2 + $0x70] sm:$0xff]  ;;  %v1688_v20 = vld [vmem:[%s2239_s4 + $0x28] sm:$0xff]  ;;  %v539_v27 = vpack.c.bf16 %v2020_v12, %v2020_v12  ;;  %s2276_s0 = sld [smem:[#allocation15_spill]]  ;;  %s525_s28 = scalar_lea.vmem [#allocation2], %s1514_s23 }
  0x23   : > { %677 = vmatpush.bf16.msra.mxu2 %v1671_v6  ;;  %702 = vmatpush.bf16.msra.mxu3 %v1673_v7  ;;  %v537_v14 = vadd.f32 %v536_v13, %v2020_v12  ;;  %v1679_v17 = vld [vmem:[%s2237_s2 + $0x60] sm:$0xff]  ;;  %v1684_v21 = vld [vmem:[%s2239_s4 + $0x8] sm:$0xff]  ;;  %v1686_v22 = vld [vmem:[%s2239_s4 + $0x18] sm:$0xff]  ;;  %s1436_s25 = sshll.u32 %s525_s28, 4  ;;  %s1424_s16 = scalar_lea.sflag [#allocation3], %s523_s20  ;;  %s1437_s25 = int_to_ptr.vmem [resolvable:$true] %s1436_s25 }
  0x24   : > { %v1687_v23 = vld [vmem:[%s2239_s4 + $0x20] sm:$0xff]  ;;  %v1685_v25 = vld [vmem:[%s2239_s4 + $0x10] sm:$0xff]  ;;  %v1690_v26 = vld [vmem:[%s2239_s4 + $0x38] sm:$0xff] }
  0x25   : > { %v538_v19 = vpack.c.bf16 %v537_v14, %v537_v14  ;;  %v1683_v24 = vld [vmem:[%s2239_s4] sm:$0xff]  ;;  %v1689_v28 = vld [vmem:[%s2239_s4 + $0x30] sm:$0xff] }
  0x26   : > { %726 = vmatpush.bf16.msrb.mxu0 %v1676_v8  ;;  %751 = vmatpush.bf16.msrb.mxu1 %v1678_v9  ;;  %v1741_v35 = vld [vmem:[%s2238_s3 + $0x4] ss:$0 sm:$0xff]  ;;  %v1742_v36 = vld [vmem:[%s2238_s3 + $0x5] ss:$0 sm:$0xff]  ;;  %v1738_v43 = vld [vmem:[%s2238_s3 + $0x1] ss:$0 sm:$0xff] }
  0x27   : > { %776 = vmatpush.bf16.msrb.mxu2 %v1680_v10  ;;  %801 = vmatpush.bf16.msrb.mxu3 %v1682_v11  ;;  %v1737_v46 = vld [vmem:[%s2238_s3] ss:$0 sm:$0xff]  ;;  %v1743_v47 = vld [vmem:[%s2238_s3 + $0x6] ss:$0 sm:$0xff]  ;;  %v1744_v48 = vld [vmem:[%s2238_s3 + $0x7] ss:$0 sm:$0xff] }
  0x28   : > { %1525 = vmatmul.msk.bf16.vlgmr.msra.gmra.mxu0 %vm616_vm0, %v538_v19  ;;  %1534 = vmatmul.msk.bf16.vlgmr.msra.gmra.mxu1 %vm616_vm0, %v538_v19  ;;  %v1739_v60 = vld [vmem:[%s2238_s3 + $0x2] ss:$0 sm:$0xff]  ;;  %v1740_v61 = vld [vmem:[%s2238_s3 + $0x3] ss:$0 sm:$0xff]  ;;  %v1745_v9 = vld [vmem:[%s2240_s5] ss:$0 sm:$0xff]  ;;  %s1434_s27 = scalar_lea.hbm %s2276_s0, %s1664_s15 }
  0x29   : > { %1543 = vmatmul.msk.bf16.vlgmr.msra.gmra.mxu2 %vm616_vm0, %v538_v19  ;;  %1552 = vmatmul.msk.bf16.vlgmr.msra.gmra.mxu3 %vm616_vm0, %v538_v19  ;;  %v1746_v10 = vld [vmem:[%s2240_s5 + $0x1] ss:$0 sm:$0xff]  ;;  %s1438_s29 = sshll.u32 %s1434_s27, 4  ;;  %s1798_s23 = scalar_lea.hbm %s2276_s0, 16  ;;  %s1439_s29 = int_to_ptr.hbm [resolvable:$true] %s1438_s29 }
  0x2a   : > { %727 = vmatpush.bf16.msrb.mxu0 %v1675_v15  ;;  %752 = vmatpush.bf16.msrb.mxu1 %v1677_v16  ;;  %v1747_v16 = vld [vmem:[%s2240_s5 + $0x2] ss:$0 sm:$0xff]  ;;  %s1792_s14 = sshra.s32 %s1439_s29, 4  ;;  %s1793_s14 = int_to_ptr.hbm [resolvable:$true] %s1792_s14 }
  0x2b   : > { %777 = vmatpush.bf16.msrb.mxu2 %v1679_v17  ;;  %802 = vmatpush.bf16.msrb.mxu3 %v1681_v18  ;;  %s1794_s15 = scalar_lea.hbm %s1793_s14, 8  ;;  %p1799_p0 = scmp.lt.s32.totalorder %s1793_s14, %s2276_s0 }
  0x2c   : > { %p1795_p11 = scmp.ne.s32.totalorder %s1793_s14, %s1794_s15  ;;  %p1800_p1 = scmp.lt.s32.totalorder %s1798_s23, %s1794_s15 }
  0x2e   : > { %861 = vmatpush.bf16.msra.mxu0 %v1684_v21  ;;  %886 = vmatpush.bf16.msra.mxu1 %v1686_v22  ;;  %p1796_p12 = pnand %p1795_p11, %p1966_p5  ;;  %p1801_p2 = por %p1800_p1, %p1799_p0 }
  0x2f   : > { %911 = vmatpush.bf16.msra.mxu2 %v1688_v20  ;;  %936 = vmatpush.bf16.msra.mxu3 %v1690_v26 }
  0x30   : > { %p1797_p13 = pneg %p1796_p12 }
  0x32   : > { %862 = vmatpush.bf16.msra.mxu0 %v1683_v24  ;;  %887 = vmatpush.bf16.msra.mxu1 %v1685_v25  ;;  %p1802_p3 = pnand %p1801_p2, %p1797_p13 }
  0x33   : > { %912 = vmatpush.bf16.msra.mxu2 %v1687_v23  ;;  %937 = vmatpush.bf16.msra.mxu3 %v1689_v28 }
  0x38   : > { %1561 = vmatmul.msk.bf16.vlgmr.msrb.gmra.mxu0 %vm616_vm0, %v538_v19  ;;  %1570 = vmatmul.msk.bf16.vlgmr.msrb.gmra.mxu1 %vm616_vm0, %v538_v19 }
  0x39   : > { %1579 = vmatmul.msk.bf16.vlgmr.msrb.gmra.mxu2 %vm616_vm0, %v538_v19  ;;  %1588 = vmatmul.msk.bf16.vlgmr.msrb.gmra.mxu3 %vm616_vm0, %v538_v19 }
  0x48   : > { %1597 = vmatmul.msk.bf16.vlgmr.msra.gmra.mxu0 %vm616_vm0, %v539_v27  ;;  %1606 = vmatmul.msk.bf16.vlgmr.msra.gmra.mxu1 %vm616_vm0, %v539_v27 }
  0x49   : > { %1615 = vmatmul.msk.bf16.vlgmr.msra.gmra.mxu2 %vm616_vm0, %v539_v27  ;;  %1624 = vmatmul.msk.bf16.vlgmr.msra.gmra.mxu3 %vm616_vm0, %v539_v27  ;;  %v1748_v27 = vld [vmem:[%s2240_s5 + $0x3] ss:$0 sm:$0xff] }
  0xa5   : > { %v629_v29 = vpop.f32.mrf.mxu0  ;;  %v654_v30 = vpop.f32.mrf.mxu1 }
  0xa6   : > { %v655_v51 = vadd.f32 %v1738_v43, %v654_v30  ;;  %v630_v54 = vadd.f32 %v1737_v46, %v629_v29 }
  0xa8   : > { %v944_v59 = vpack.c.bf16 %v655_v51, %v655_v51  ;;  %v943_v0 = vpack.c.bf16 %v630_v54, %v630_v54 }
  0xac   : > { %v679_v31 = vpop.f32.mrf.mxu2  ;;  %v704_v32 = vpop.f32.mrf.mxu3 }
  0xad   : > { %v631_v33 = vpop.f32.mrf.mxu0  ;;  %v656_v34 = vpop.f32.mrf.mxu1  ;;  %v680_v3 = vadd.f32 %v1739_v60, %v679_v31  ;;  %v705_v4 = vadd.f32 %v1740_v61, %v704_v32 }
  0xaf   : > { %v945_v7 = vpack.c.bf16 %v680_v3, %v680_v3  ;;  %v946_v8 = vpack.c.bf16 %v705_v4, %v705_v4 }
  0xb4   : > { %v681_v37 = vpop.f32.mrf.mxu2  ;;  %v706_v38 = vpop.f32.mrf.mxu3 }
  0xb5   : > { %v729_v39 = vpop.f32.mrf.mxu0  ;;  %v754_v40 = vpop.f32.mrf.mxu1 }
  0xb6   : > { %v730_v41 = vadd.f32 %v1741_v35, %v729_v39  ;;  %v755_v42 = vadd.f32 %v1742_v36, %v754_v40 }
  0xb8   : > { %v947_v44 = vpack.c.bf16 %v730_v41, %v730_v41  ;;  %v948_v45 = vpack.c.bf16 %v755_v42, %v755_v42 }
  0xba   : > { %v956_v49 = vsel %vm951_vm1, %v947_v44, 0  ;;  %v975_v50 = vsel %vm951_vm1, %v948_v45, 0 }
  0xbb   : > { %965 = vmatpush.bf16.xpose.msrb.mxu0 %v956_v49  ;;  %984 = vmatpush.bf16.xpose.msrb.mxu1 %v975_v50 }
  0xbc   : > { %v779_v52 = vpop.f32.mrf.mxu2  ;;  %v804_v53 = vpop.f32.mrf.mxu3 }
  0xbd   : > { %v780_v55 = vadd.f32 %v1743_v47, %v779_v52  ;;  %v805_v56 = vadd.f32 %v1744_v48, %v804_v53  ;;  %v731_v57 = vpop.f32.mrf.mxu0  ;;  %v756_v58 = vpop.f32.mrf.mxu1 }
  0xbf   : > { %v949_v62 = vpack.c.bf16 %v780_v55, %v780_v55  ;;  %v950_v63 = vpack.c.bf16 %v805_v56, %v805_v56 }
  0xc1   : > { %v994_v1 = vsel %vm951_vm1, %v949_v62, 0  ;;  %v1013_v2 = vsel %vm951_vm1, %v950_v63, 0 }
  0xc2   : > { %1003 = vmatpush.bf16.xpose.msrb.mxu2 %v994_v1  ;;  %1022 = vmatpush.bf16.xpose.msrb.mxu3 %v1013_v2 }
  0xc3   : > { %1625 = vmatmul.msk.bf16.vlgmr.msrb.gmra.mxu0 %vm951_vm1, %v943_v0  ;;  %1626 = vmatmul.msk.bf16.vlgmr.msrb.gmra.mxu1 %vm951_vm1, %v944_v59 }
  0xc4   : > { %v781_v5 = vpop.f32.mrf.mxu2  ;;  %v806_v6 = vpop.f32.mrf.mxu3 }
  0xc5   : > { %v864_v11 = vpop.f32.mrf.mxu0  ;;  %v889_v13 = vpop.f32.mrf.mxu1 }
  0xc6   : > { %v865_v14 = vadd.f32 %v1745_v9, %v864_v11  ;;  %v890_v15 = vadd.f32 %v1746_v10, %v889_v13 }
  0xc8   : > { %v1080_v17 = vpack.c.bf16 %v865_v14, %v865_v14  ;;  %v1081_v18 = vpack.c.bf16 %v890_v15, %v890_v15 }
  0xc9   : > { %1627 = vmatmul.msk.bf16.vlgmr.msrb.gmra.mxu2 %vm951_vm1, %v945_v7  ;;  %1628 = vmatmul.msk.bf16.vlgmr.msrb.gmra.mxu3 %vm951_vm1, %v946_v8 }
  0xca   : > { %v1089_v20 = vsel %vm1087_vm2, %v1080_v17, 0  ;;  %v1108_v21 = vsel %vm1087_vm2, %v1081_v18, 0 }
  0xcb   : > { %1098 = vmatpush.bf16.msra.mxu0 %v1089_v20  ;;  %1117 = vmatpush.bf16.msra.mxu1 %v1108_v21 }
  0xcc   : > { %v914_v19 = vpop.f32.mrf.mxu2  ;;  %v939_v28 = vpop.f32.mrf.mxu3 }
  0xcd   : > { %v915_v22 = vadd.f32 %v1747_v16, %v914_v19  ;;  %v866_v24 = vpop.f32.mrf.mxu0  ;;  %v891_v25 = vpop.f32.mrf.mxu1  ;;  %v940_v30 = vadd.f32 %v1748_v27, %v939_v28  ;;  %v1163_v27 = vld [vmem:[%s2241_s6 + $0x8] sm:$0xf] }
  0xce   : > { %v1162_v25 = vld [vmem:[%s2241_s6 + $0x4] sm:$0xf]  ;;  %v1211_v28 = vsel %vm1087_vm2, %v1163_v27, 0 }
  0xcf   : > { %v1082_v23 = vpack.c.bf16 %v915_v22, %v915_v22  ;;  %v1083_v31 = vpack.c.bf16 %v940_v30, %v940_v30 }
  0xd1   : > { %v1127_v26 = vsel %vm1087_vm2, %v1082_v23, 0  ;;  %v1146_v32 = vsel %vm1087_vm2, %v1083_v31, 0  ;;  %v1161_v23 = vld [vmem:[%s2241_s6] sm:$0xf] }
  0xd2   : > { %1136 = vmatpush.bf16.msra.mxu2 %v1127_v26  ;;  %1155 = vmatpush.bf16.msra.mxu3 %v1146_v32  ;;  %v1173_v24 = vsel %vm1087_vm2, %v1161_v23, 0  ;;  %v1192_v26 = vsel %vm1087_vm2, %v1162_v25, 0  ;;  %v1750_v23 = vld [vmem:[%s2247_s12] ss:$0 sm:$0xff] }
  0xd3   : > { %1182 = vmatpush.bf16.msrb.mxu0 %v1173_v24  ;;  %1201 = vmatpush.bf16.msrb.mxu1 %v1192_v26  ;;  %v1751_v25 = vld [vmem:[%s2248_s13] ss:$0 sm:$0xff] }
  0xd4   : > { %v916_v29 = vpop.f32.mrf.mxu2  ;;  %v941_v33 = vpop.f32.mrf.mxu3 }
  0xd5   : > { %v1164_v29 = vld [vmem:[%s2241_s6 + $0xc] sm:$0xf] }
  0xd6   : > { %1220 = vmatpush.bf16.msrb.mxu2 %v1211_v28  ;;  %v1230_v30 = vsel %vm1087_vm2, %v1164_v29, 0 }
  0xd7   : > { %1239 = vmatpush.bf16.msrb.mxu3 %v1230_v30  ;;  %v1694_v30 = vld [vmem:[%s2245_s10 + $0x8] sm:$0xff] }
 0x140   : > { %v967_v34 = vpop.f32.mrf.mxu0  ;;  %v986_v35 = vpop.f32.mrf.mxu1 }
 0x141   : > { %v1028_v36 = vmul.f32 0.35355338, %v967_v34  ;;  %v1029_v38 = vmul.f32 0.35355338, %v986_v35 }
 0x143   : > { %v1032_v37 = vsel %vm951_vm1, %v1028_v36, -inf  ;;  %v1035_v41 = vsel %vm951_vm1, %v1029_v38, -inf }
 0x144   : > { %1033 = vmax.xlane.f32.xlu1 %v1032_v37 }
 0x148   : > { %v969_v39 = vpop.f32.mrf.mxu0  ;;  %v988_v40 = vpop.f32.mrf.mxu1 }
 0x14c   : > { %v1005_v42 = vpop.f32.mrf.mxu2  ;;  %v1024_v43 = vpop.f32.mrf.mxu3  ;;  %1036 = vmax.xlane.f32.xlu1 %v1035_v41 }
 0x14d   : > { %v1030_v44 = vmul.f32 0.35355338, %v1005_v42  ;;  %v1031_v46 = vmul.f32 0.35355338, %v1024_v43 }
 0x14f   : > { %v1038_v45 = vsel %vm951_vm1, %v1030_v44, -inf  ;;  %v1041_v49 = vsel %vm951_vm1, %v1031_v46, -inf }
 0x150   : > { %1039 = vmax.xlane.f32.xlu0 %v1038_v45 }
 0x154   : > { %v1007_v47 = vpop.f32.mrf.mxu2  ;;  %v1026_v48 = vpop.f32.mrf.mxu3 }
 0x158   : > { %1042 = vmax.xlane.f32.xlu0 %v1041_v49 }
 0x1b7   : > { %v1034_v50 = vpop.xlane.xlu1 %1033 }
 0x1b8   : > { %v1044_v51 = vsub.f32 %v1028_v36, %v1034_v50 }
 0x1ba   : > { %v1048_v52 = vmul.f32 1.442695, %v1044_v51 }
 0x1bc   : > { %1756 = vpow2.f32 %v1048_v52 }
 0x1bf   : > { %v1037_v53 = vpop.xlane.xlu1 %1036 }
 0x1c0   : > { %v1045_v54 = vsub.f32 %v1029_v38, %v1037_v53 }
 0x1c2   : > { %v1757_v55 = vpop.eup %1756  ;;  %v1050_v56 = vmul.f32 1.442695, %v1045_v54 }
 0x1c3   : > { %v1040_v57 = vpop.xlane.xlu0 %1039  ;;  %v1056_v58 = vsel %vm951_vm1, %v1757_v55, 0.0 }
 0x1c4   : > { %1758 = vpow2.f32 %v1050_v56  ;;  %v1046_v59 = vsub.f32 %v1030_v44, %v1040_v57  ;;  %1057 = vadd.xlane.f32.xlu0 %v1056_v58 }
 0x1c6   : > { %v1052_v60 = vmul.f32 1.442695, %v1046_v59 }
 0x1c8   : > { %1760 = vpow2.f32 %v1052_v60 }
 0x1ca   : > { %v1759_v61 = vpop.eup %1758 }
 0x1cb   : > { %v1043_v62 = vpop.xlane.xlu0 %1042  ;;  %v1059_v63 = vsel %vm951_vm1, %v1759_v61, 0.0 }
 0x1cc   : > { %v1047_v0 = vsub.f32 %v1031_v46, %v1043_v62  ;;  %1060 = vadd.xlane.f32.xlu1 %v1059_v63  ;;  %v1842_v62 = vmov 32.0  }
 0x1ce   : > { %v1761_v1 = vpop.eup %1760  ;;  %v1054_v2 = vmul.f32 1.442695, %v1047_v0 }
 0x1cf   : > { %v1062_v3 = vsel %vm951_vm1, %v1761_v1, 0.0 }
 0x1d0   : > { %1762 = vpow2.f32 %v1054_v2  ;;  %1063 = vadd.xlane.f32.xlu2 %v1062_v3 }
 0x1d6   : > { %v1763_v4 = vpop.eup %1762 }
 0x1d7   : > { %v1065_v5 = vsel %vm951_vm1, %v1763_v4, 0.0 }
 0x1d8   : > { %1066 = vadd.xlane.f32.xlu2 %v1065_v5 }
 0x237   : > { %v1058_v6 = vpop.xlane.xlu0 %1057 }
 0x238   : > { %1764 = vrcp.f32 %v1058_v6 }
 0x23e   : > { %v1765_v7 = vpop.eup %1764 }
 0x23f   : > { %v1072_v8 = vmul.f32 %v1765_v7, %v1757_v55  ;;  %v1061_v9 = vpop.xlane.xlu1 %1060  ;;  %v1749_v55 = vld [vmem:[%s2242_s7] ss:$0 sm:$0xff] }
 0x240   : > { %1766 = vrcp.f32 %v1061_v9 }
 0x241   : > { %v1076_v10 = vpack.c.bf16 %v1072_v8, %v1072_v8 }
 0x243   : > { %v1064_v11 = vpop.xlane.xlu2 %1063  ;;  %1629 = vmatmul.msk.bf16.vlgmr.msra.gmra.mxu0 %vm951_vm1, %v1076_v10  ;;  %v1691_v10 = vld [vmem:[%s2243_s8] sm:$0xff] }
 0x244   : > { %1768 = vrcp.f32 %v1064_v11  ;;  %v1696_v11 = vld [vmem:[%s2245_s10 + $0x18] sm:$0xff] }
 0x246   : > { %v1767_v13 = vpop.eup %1766 }
 0x247   : > { %v1073_v14 = vmul.f32 %v1767_v13, %v1759_v61 }
 0x249   : > { %v1077_v15 = vpack.c.bf16 %v1073_v14, %v1073_v14 }
 0x24a   : > { %v1769_v16 = vpop.eup %1768 }
 0x24b   : > { %v1074_v17 = vmul.f32 %v1769_v16, %v1761_v1  ;;  %v1067_v18 = vpop.xlane.xlu2 %1066  ;;  %1630 = vmatmul.msk.bf16.vlgmr.msra.gmra.mxu1 %vm951_vm1, %v1077_v15  ;;  %v1695_v15 = vld [vmem:[%s2245_s10 + $0x10] sm:$0xff] }
 0x24c   : > { %1770 = vrcp.f32 %v1067_v18  ;;  %1380 = vmatpush.bf16.msra.mxu1 %v1696_v11 }
 0x24d   : > { %v1078_v19 = vpack.c.bf16 %v1074_v17, %v1074_v17  ;;  %1772 = vrcp.f32 %v1842_v62 }
 0x24f   : > { %1631 = vmatmul.msk.bf16.vlgmr.msra.gmra.mxu2 %vm951_vm1, %v1078_v19 }
 0x250   : > { %1381 = vmatpush.bf16.msra.mxu1 %v1695_v15 }
 0x252   : > { %v1771_v20 = vpop.eup %1770 }
 0x253   : > { %v1075_v21 = vmul.f32 %v1771_v20, %v1763_v4  ;;  %v1773_v63 = vpop.eup %1772 }
 0x254   : > { %v1264_v0 = vmul.f32 32.0, %v1773_v63  ;;  %vm1268_vm3 = vweird.f32 %v1773_v63  ;;  %1382 = vmatpush.bf16.msra.mxu1 %v1694_v30 }
 0x255   : > { %v1079_v22 = vpack.c.bf16 %v1075_v21, %v1075_v21 }
 0x256   : > { %v1265_v1 = vsub.f32 1.0, %v1264_v0 }
 0x257   : > { %1632 = vmatmul.msk.bf16.vlgmr.msra.gmra.mxu3 %vm951_vm1, %v1079_v22 }
 0x258   : > { %v1266_v2 = vmul.f32 %v1773_v63, %v1265_v1 }
 0x25a   : > { %v1267_v3 = vadd.f32 %v1773_v63, %v1266_v2 }
 0x25c   : > { %v1269_v4 = vsel %vm1268_vm3, %v1773_v63, %v1267_v3 }
 0x2c0   : > { %v1100_v31 = vpop.f32.mrf.mxu0 }
 0x2c1   : > { %v1165_v32 = vpack.c.bf16 %v1100_v31, %v1100_v31  ;;  %v1693_v31 = vld [vmem:[%s2245_s10] sm:$0xff] }
 0x2c2   : > { %1383 = vmatpush.bf16.msra.mxu1 %v1693_v31 }
 0x2c3   : > { %1633 = vmatmul.msk.bf16.vlgmr.msrb.gmra.mxu0 %vm951_vm1, %v1165_v32  ;;  %v1752_v32 = vld [vmem:[%s2244_s9] ss:$0 sm:$0xff] }
 0x2c8   : > { %v1102_v33 = vpop.f32.mrf.mxu0  ;;  %v1119_v34 = vpop.f32.mrf.mxu1 }
 0x2c9   : > { %v1166_v35 = vpack.c.bf16 %v1119_v34, %v1119_v34 }
 0x2cb   : > { %1634 = vmatmul.msk.bf16.vlgmr.msrb.gmra.mxu1 %vm951_vm1, %v1166_v35 }
 0x2d0   : > { %v1121_v36 = vpop.f32.mrf.mxu1 }
 0x2d2   : > { %v1138_v37 = vpop.f32.mrf.mxu2 }
 0x2d3   : > { %v1167_v38 = vpack.c.bf16 %v1138_v37, %v1138_v37 }
 0x2d5   : > { %1635 = vmatmul.msk.bf16.vlgmr.msrb.gmra.mxu2 %vm951_vm1, %v1167_v38  ;;  %v1753_v38 = vld [vmem:[%s2246_s11] ss:$0 sm:$0xff] }
 0x2da   : > { %v1140_v39 = vpop.f32.mrf.mxu2  ;;  %v1157_v40 = vpop.f32.mrf.mxu3 }
 0x2db   : > { %v1168_v41 = vpack.c.bf16 %v1157_v40, %v1157_v40 }
 0x2dd   : > { %1636 = vmatmul.msk.bf16.vlgmr.msrb.gmra.mxu3 %vm951_vm1, %v1168_v41 }
 0x2e2   : > { %v1159_v42 = vpop.f32.mrf.mxu3 }
 0x340   : > { %v1184_v43 = vpop.f32.mrf.mxu0 }
 0x341   : > { %v1245_v49 = vsel %vm616_vm0, %v1184_v43, 0.0 }
 0x348   : > { %v1186_v44 = vpop.f32.mrf.mxu0  ;;  %v1203_v45 = vpop.f32.mrf.mxu1 }
 0x349   : > { %v1246_v48 = vsel %vm616_vm0, %v1203_v45, 0.0 }
 0x34a   : > { %v1247_v51 = vadd.f32 %v1246_v48, %v1245_v49 }
 0x350   : > { %v1205_v46 = vpop.f32.mrf.mxu1 }
 0x358   : > { %v1222_v47 = vpop.f32.mrf.mxu2 }
 0x359   : > { %v1248_v50 = vsel %vm616_vm0, %v1222_v47, 0.0 }
 0x35a   : > { %v1249_v52 = vadd.f32 %v1248_v50, %v1247_v51 }
 0x360   : > { %v1224_v53 = vpop.f32.mrf.mxu2  ;;  %v1241_v54 = vpop.f32.mrf.mxu3 }
 0x361   : > { %v1250_v56 = vsel %vm616_vm0, %v1241_v54, 0.0 }
 0x362   : > { %v1251_v57 = vadd.f32 %v1250_v56, %v1249_v52 }
 0x364   : > { %v1256_v58 = vadd.f32 %v1749_v55, %v1251_v57 }
 0x366   : > { %v1257_v59 = vadd.f32 %v1256_v58, %v2020_v12  ;;  %v1692_v12 = vld [vmem:[%s2243_s8 + $0x8] sm:$0xff]  ;;  %v1754_v58 = vld [vmem:[%s2275_s21] ss:$0 sm:$0xff] }
 0x367   : > { %1327 = vmatpush.bf16.msra.mxu0 %v1692_v12 }
 0x368   : > { %v1243_v60 = vpop.f32.mrf.mxu3  ;;  %v1260_v61 = vsel %vm616_vm0, %v1257_v59, 0.0 }
 0x369   : > { %1261 = vadd.xlane.f32.xlu2 %v1260_v61  ;;  %v1755_v61 = vld [vmem:[%s2278_s26] ss:$0 sm:$0xff] }
 0x36b   : > { %1328 = vmatpush.bf16.msra.mxu0 %v1691_v10 }
 0x3dc   : > { %v1262_v5 = vpop.xlane.xlu2 %1261 }
 0x3dd   : > { %v1270_v6 = vmul.f32 %v1269_v4, %v1262_v5 }
 0x3df   : > { %v1271_v7 = vsub.f32 %v1257_v59, %v1270_v6 }
 0x3e1   : > { %v1272_v8 = vmul.f32 %v1271_v7, %v1271_v7 }
 0x3e3   : > { %v1273_v9 = vsel %vm616_vm0, %v1272_v8, 0.0 }
 0x3e4   : > { %1274 = vadd.xlane.f32.xlu0 %v1273_v9 }
 0x457   : > { %v1275_v13 = vpop.xlane.xlu0 %1274 }
 0x458   : > { %v1276_v14 = vmul.f32 %v1275_v13, %v1269_v4 }
 0x45a   : > { %v1277_v16 = vadd.f32 1e-05, %v1276_v14 }
 0x45c   : > { %1774 = vrsqrt.f32 %v1277_v16  ;;  %vm1284_vm5 = vweird.f32 %v1277_v16 }
 0x462   : > { %v1775_v17 = vpop.eup %1774 }
 0x463   : > { %v1279_v18 = vmul.f32 %v1775_v17, %v1277_v16  ;;  %vm1285_vm4 = vweird.f32 %v1775_v17 }
 0x464   : > { %vm1286_vm6 = vmor %vm1284_vm5, %vm1285_vm4 }
 0x465   : > { %v1280_v19 = vmul.f32 %v1775_v17, %v1279_v18 }
 0x467   : > { %v1281_v20 = vmul.f32 0.5, %v1280_v19 }
 0x469   : > { %v1282_v21 = vsub.f32 1.5, %v1281_v20 }
 0x46b   : > { %v1283_v22 = vmul.f32 %v1775_v17, %v1282_v21 }
 0x46d   : > { %v1287_v24 = vsel %vm1286_vm6, %v1775_v17, %v1283_v22 }
 0x46e   : > { %v1288_v26 = vmul.f32 %v1287_v24, %v1271_v7 }
 0x470   : > { %v1292_v27 = vmul.f32 %v1750_v23, %v1288_v26 }
 0x472   : > { %v1296_v28 = vadd.f32 %v1751_v25, %v1292_v27 }
 0x474   : > { %v1301_v29 = vpack.c.bf16 %v1296_v28, %v1296_v28 }
 0x476   : > { %1645 = vmatmul.msk.bf16.vlgmr.msra.gmra.mxu0 %vm616_vm0, %v1301_v29 }
 0x4f3   : > { %v1330_v33 = vpop.f32.mrf.mxu0 }
 0x4f4   : > { %v1331_v34 = vadd.f32 %v1752_v32, %v1330_v33 }
 0x4f6   : > { %v1334_v35 = vmax.f32 %v1331_v34, 0.0 }
 0x4f8   : > { %v1343_v36 = vpack.c.bf16 %v1334_v35, %v1334_v35 }
 0x4fa   : > { %1662 = vmatmul.msk.bf16.vlgmr.msra.gmra.mxu1 %vm1372_vm7, %v1343_v36 }
 0x4fb   : > { %v1332_v37 = vpop.f32.mrf.mxu0 }
 0x577   : > { %v1385_v39 = vpop.f32.mrf.mxu1 }
 0x578   : > { %v1386_v40 = vadd.f32 %v1753_v38, %v1385_v39 }
 0x57a   : > { %v1389_v41 = vadd.f32 %v1386_v40, %v1296_v28 }
 0x57c   : > { %v1392_v42 = vsel %vm616_vm0, %v1389_v41, 0.0 }
 0x57d   : > { %1393 = vadd.xlane.f32.xlu1 %v1392_v42 }
 0x57f   : > { %v1387_v43 = vpop.f32.mrf.mxu1 }
 0x5f0   : > { %v1394_v44 = vpop.xlane.xlu1 %1393 }
 0x5f1   : > { %v1395_v45 = vmul.f32 %v1394_v44, %v1269_v4 }
 0x5f3   : > { %v1396_v46 = vsub.f32 %v1389_v41, %v1395_v45 }
 0x5f5   : > { %v1397_v47 = vmul.f32 %v1396_v46, %v1396_v46 }
 0x5f7   : > { %v1398_v48 = vsel %vm616_vm0, %v1397_v47, 0.0 }
 0x5f8   : > { %1399 = vadd.xlane.f32.xlu2 %v1398_v48 }
 0x66b   : > { %v1400_v49 = vpop.xlane.xlu2 %1399 }
 0x66c   : > { %v1401_v50 = vmul.f32 %v1400_v49, %v1269_v4 }
 0x66e   : > { %v1402_v51 = vadd.f32 1e-05, %v1401_v50 }
 0x670   : > { %1776 = vrsqrt.f32 %v1402_v51  ;;  %vm1409_vm9 = vweird.f32 %v1402_v51 }
 0x676   : > { %v1777_v52 = vpop.eup %1776 }
 0x677   : > { %v1404_v53 = vmul.f32 %v1777_v52, %v1402_v51  ;;  %vm1410_vm8 = vweird.f32 %v1777_v52 }
 0x678   : > { %vm1411_vm10 = vmor %vm1409_vm9, %vm1410_vm8 }
 0x679   : > { %v1405_v54 = vmul.f32 %v1777_v52, %v1404_v53 }
 0x67b   : > { %v1406_v55 = vmul.f32 0.5, %v1405_v54 }
 0x67d   : > { %v1407_v56 = vsub.f32 1.5, %v1406_v55 }
 0x67f   : > { %v1408_v57 = vmul.f32 %v1777_v52, %v1407_v56 }
 0x681   : > { %v1412_v59 = vsel %vm1411_vm10, %v1777_v52, %v1408_v57 }
 0x682   : > { %v1413_v60 = vmul.f32 %v1412_v59, %v1396_v46 }
 0x684   : > { %v1417_v62 = vmul.f32 %v1754_v58, %v1413_v60 }
 0x686   : > { %v1421_v63 = vadd.f32 %v1755_v61, %v1417_v62 }
 0x688   : > { %1422 = vst.msk [vmem:[%s525_s28] sm:$0xff] %vm616_vm0, %v1421_v63 }
 0x689   : > { %1805 = shalt.err (!%p1802_p3)
}
 0x68a   : > { %1697 = dma.vmem_to_hbm [thread:$0]  (%p1966_p5), %s1437_s25, 128, %s1439_s29, %s1424_s16  }
 0x68b PF: > { %s2279_s20 = sld [smem:[#allocation7_spill]] }
 0x68c   : > { %s2280_s17 = sld [smem:[#allocation5_spill]] }
 0x691   : > { %p1703_p4 = scmp.ge.s32.totalorder %s2279_s20, 2 }
 0x692   : > { %s1450_s26 = sand.u32 1, %s2280_s17  }
 0x693   : > { %p1700_p7 = pnand %p1703_p4, %p1970_p6  ;;  %s1451_s28 = scalar_lea.sflag [#allocation3], %s1450_s26 }
 0x695   : > { %p1701_p8 = pneg %p1700_p7 }
 0x697   : > { %1823 = dma.done.wait (%p1701_p8), %s1451_s28, 128  }
 0x698   : > { %1825 = vsyncadd (%p1701_p8), %s1451_s28, 4294967168  ;;  %s2282_s24 = sld [smem:[#allocation8_spill]]  ;;  %s2285_s21 = smov %s1832_s22 }
 0x699   : > { %s2283_s14 = sld [smem:[#allocation6_spill]] }
 0x69a   : > { %s2284_s23 = sld [smem:[#allocation9_spill]] }
 0x69e   : > { %p26_p9 = scmp.ge.s32.totalorder %s2282_s24, 4  }
 0x69f   : > { %s2286_s22 = smov %s2283_s14 }
 0x6a0   :  { %28 = sbr.rel (!%p26_p9) target bundleno = 8 (0x8), region = 122 }
 0x6a5   :  { %1457 = vsyncpa [#allocation3], 1 }
 0x6a6   :  { %1459 = vsyncpa [#allocation3 + $0x1], 1 }

</bundles_post_ra>
